<compile_context>
chip_gen: v6e
topology: v6e:2x2x1
jax: 0.10.0
libtpu: 0.0.40
codegen_flags: <defaults>
</compile_context>

<pallas_src>
import jax
import jax.numpy as jnp
from jax.experimental import pallas as pl
from jax.experimental.pallas import tpu as pltpu

LAYER_DIMS = (896, 256, 128, 64, 32, 1)   # fc1..fc5 in/out chain
NUM_LAYERS = len(LAYER_DIMS) - 1
_TILE_B = 128                             # batch rows per grid step when streaming
_BIAS_ROWS, _BIAS_LANES = 8, 256          # packed-bias buffer (sublane/lane padded)


def _round_up(n, m):
    return (n + m - 1) // m * m


# ------------------------------ Pallas kernel ---------------------------------
def _mlp_kernel(x_ref, w1_ref, w2_ref, w3_ref, w4_ref, w5_ref, bias_ref, o_ref):
    """Fused 5-layer MLP for one batch tile.

    Weights are bf16 (MXU-native), accumulation is f32. bias_ref is the packed
    (8, 256) f32 buffer: row k holds layer-k's bias, zero-padded along lanes.
    """

    def layer(h, w_ref, b, relu):
        y = jnp.dot(h.astype(jnp.bfloat16), w_ref[...],
                    preferred_element_type=jnp.float32) + b
        return jnp.maximum(y, 0.0) if relu else y

    h = layer(x_ref[...], w1_ref, bias_ref[0:1, 0:256], True)   # (TB, 256)
    h = layer(h,          w2_ref, bias_ref[1:2, 0:128], True)   # (TB, 128)
    h = layer(h,          w3_ref, bias_ref[2:3, 0:64],  True)   # (TB, 64)
    h = layer(h,          w4_ref, bias_ref[3:4, 0:32],  True)   # (TB, 32)
    y = layer(h,          w5_ref, bias_ref[4:5, 0:1],   False)  # (TB, 1)
    # Sigmoid: exp goes to the EUP slot, divide on the VPU.
    o_ref[...] = 1.0 / (1.0 + jnp.exp(-y))


# --------------------------- one-time parameter prep ---------------------------
def prepare_params(torch_params):
    """Hoisted out of the dispatch path:
       * transpose torch (out, in) weights -> (in, out) and cast to bf16,
       * pack all 5 biases into a single (8, 256) f32 buffer (row k = layer k)."""
    weights = tuple(jnp.asarray(w, jnp.float32).T.astype(jnp.bfloat16)
                    for w, _ in torch_params)
    bias_pack = jnp.zeros((_BIAS_ROWS, _BIAS_LANES), jnp.float32)
    for i, (_, b) in enumerate(torch_params):
        b = jnp.asarray(b, jnp.float32)
        bias_pack = bias_pack.at[i, : b.shape[0]].set(b)
    return weights, bias_pack


# ---------------------------------- wrapper ------------------------------------
def joint_viability_forward(x, weights, bias_pack):
    """x: (B, 896) float32 (or bfloat16) -> sigmoid output with torch .squeeze()."""
    Bn, d_in = x.shape
    assert d_in == LAYER_DIMS[0]

    # Pad the batch to >= 8 rows (f32 sublane) or to a multiple of the 128-row tile.
    tile_b = _TILE_B if Bn >= _TILE_B else _round_up(max(Bn, 1), 8)
    b_pad = _round_up(Bn, tile_b)
    if b_pad != Bn:
        x = jnp.pad(x, ((0, b_pad - Bn), (0, 0)))
    n_tiles = b_pad // tile_b

    args = (x, *weights, bias_pack)
    out_shape = jax.ShapeDtypeStruct((b_pad, 1), jnp.float32)

    if n_tiles == 1:
        # Tiny batch: one step -> no grid, no pipeline machinery; everything VMEM-resident.
        out = pl.pallas_call(_mlp_kernel, out_shape=out_shape)(*args)
    else:
        resident = lambda i: (0, 0)          # same block every step -> weights DMA'd once
        in_specs = [pl.BlockSpec((tile_b, d_in), lambda i: (i, 0))]
        in_specs += [pl.BlockSpec(a.shape, resident) for a in (*weights, bias_pack)]
        out = pl.pallas_call(
            _mlp_kernel,
            out_shape=out_shape,
            grid=(n_tiles,),
            in_specs=in_specs,
            out_specs=pl.BlockSpec((tile_b, 1), lambda i: (i, 0)),
            compiler_params=pltpu.CompilerParams(
                dimension_semantics=("parallel",)),   # both TensorCores on v7x
        )(*args)

    # torch's x.squeeze(): (B,) for B > 1, scalar for B == 1.
    return jnp.squeeze(out[:Bn])


# ----------------------------- pure-JAX references -----------------------------
def ref_forward_f32(x, torch_params):
    """Full-f32 reference with torch semantics."""
    h = x
    for i, (w, b) in enumerate(torch_params):
        h = h @ jnp.asarray(w, jnp.float32).T + jnp.asarray(b, jnp.float32)
        h = jnp.maximum(h, 0.0) if i < NUM_LAYERS - 1 else 1.0 / (1.0 + jnp.exp(-h))
    return jnp.squeeze(h)


def ref_forward_bf16(x, weights, torch_params):
    """Reference matching the kernel's numerics (bf16 operands, f32 accumulation)."""
    h = x
    for i, w in enumerate(weights):
        b = jnp.asarray(torch_params[i][1], jnp.float32)
        h = jnp.dot(h.astype(jnp.bfloat16), w, preferred_element_type=jnp.float32) + b
        h = jnp.maximum(h, 0.0) if i < NUM_LAYERS - 1 else 1.0 / (1.0 + jnp.exp(-h))
    return jnp.squeeze(h)


# --------------------------------- parameters ----------------------------------
def init_torch_params(key):
    """Random params in torch Linear layout: weight (out, in), bias (out,)."""
    params = []
    keys = jax.random.split(key, 2 * NUM_LAYERS)
    for li in range(NUM_LAYERS):
        d_in, d_out = LAYER_DIMS[li], LAYER_DIMS[li + 1]
        scale = 1.0 / (d_in ** 0.5)
        w = scale * jax.random.normal(keys[2 * li], (d_out, d_in), dtype=jnp.float32)
        b = scale * jax.random.normal(keys[2 * li + 1], (d_out,), dtype=jnp.float32)
        params.append((w, b))
    return params


# ------------------------------------ main --------------------------------------
if __name__ == "__main__":
    key = jax.random.PRNGKey(0)
    k_p, k_x1, k_x2 = jax.random.split(key, 3)

    torch_params = init_torch_params(k_p)
    weights, bias_pack = prepare_params(torch_params)

    # --- tiny batch (B = 2): padded to 8 rows, single-step (no-grid) path -------
    x1 = jax.random.normal(k_x1, (2, LAYER_DIMS[0]), dtype=jnp.float32)
    out1 = jax.block_until_ready(joint_viability_forward(x1, weights, bias_pack))
    assert out1.shape == (2,), out1.shape
    ref1_bf = ref_forward_bf16(x1, weights, torch_params)
    ref1_f32 = ref_forward_f32(x1, torch_params)
    assert jnp.allclose(out1, ref1_bf, atol=1e-4, rtol=1e-4), \
        f"matched-precision err {float(jnp.max(jnp.abs(out1 - ref1_bf)))}"
    assert jnp.allclose(out1, ref1_f32, atol=3e-2, rtol=3e-2), \
        f"f32-reference err {float(jnp.max(jnp.abs(out1 - ref1_f32)))}"

    # --- streaming batch (B = 300): grid of 128-row tiles, weights resident -----
    x2 = jax.random.normal(k_x2, (300, LAYER_DIMS[0]), dtype=jnp.float32)
    out2 = jax.block_until_ready(joint_viability_forward(x2, weights, bias_pack))
    assert out2.shape == (300,), out2.shape
    ref2_bf = ref_forward_bf16(x2, weights, torch_params)
    ref2_f32 = ref_forward_f32(x2, torch_params)
    assert jnp.allclose(out2, ref2_bf, atol=1e-4, rtol=1e-4), \
        f"matched-precision err {float(jnp.max(jnp.abs(out2 - ref2_bf)))}"
    assert jnp.allclose(out2, ref2_f32, atol=3e-2, rtol=3e-2), \
        f"f32-reference err {float(jnp.max(jnp.abs(out2 - ref2_f32)))}"

    print("KERNEL_OK")
</pallas_src>

<mosaic_0001>
module attributes {stable_mosaic.version = 11 : i64} {
  func.func @_mlp_kernel(%arg0: memref<8x896xf32, #tpu.memory_space<vmem>>, %arg1: memref<896x256xbf16, #tpu.memory_space<vmem>>, %arg2: memref<256x128xbf16, #tpu.memory_space<vmem>>, %arg3: memref<128x64xbf16, #tpu.memory_space<vmem>>, %arg4: memref<64x32xbf16, #tpu.memory_space<vmem>>, %arg5: memref<32x1xbf16, #tpu.memory_space<vmem>>, %arg6: memref<8x256xf32, #tpu.memory_space<vmem>>, %arg7: memref<8x1xf32, #tpu.memory_space<vmem>>) attributes {dimension_semantics = [], scalar_prefetch = 0 : i64, scratch_operands = 0 : i64, tpu.core_type = #tpu.core_type<tc>} {
    %c0 = arith.constant 0 : index
    %c0_0 = arith.constant 0 : index
    %0 = vector.load %arg0[%c0, %c0_0] : memref<8x896xf32, #tpu.memory_space<vmem>>, vector<8x896xf32>
    %c0_1 = arith.constant 0 : index
    %c0_2 = arith.constant 0 : index
    %1 = vector.load %arg6[%c0_1, %c0_2] : memref<8x256xf32, #tpu.memory_space<vmem>>, vector<1x256xf32>
    %2 = arith.truncf %0 : vector<8x896xf32> to vector<8x896xbf16>
    %c0_3 = arith.constant 0 : index
    %c0_4 = arith.constant 0 : index
    %3 = vector.load %arg1[%c0_3, %c0_4] : memref<896x256xbf16, #tpu.memory_space<vmem>>, vector<896x256xbf16>
    %cst = arith.constant dense<0.000000e+00> : vector<8x256xf32>
    %4 = tpu.matmul %2, %3, %cst {dimension_numbers = #tpu.dot_dimension_numbers<[1], [0], [0], [1], [0, 0, 1, 1], [], []>} : vector<8x896xbf16>, vector<896x256xbf16>, vector<8x256xf32> -> vector<8x256xf32>
    %5 = vector.broadcast %1 : vector<1x256xf32> to vector<8x256xf32>
    %6 = arith.addf %4, %5 : vector<8x256xf32>
    %cst_5 = arith.constant 0.000000e+00 : f32
    %7 = vector.broadcast %cst_5 : f32 to vector<8x256xf32>
    %8 = arith.maximumf %6, %7 : vector<8x256xf32>
    %c1 = arith.constant 1 : index
    %c0_6 = arith.constant 0 : index
    %9 = vector.load %arg6[%c1, %c0_6] : memref<8x256xf32, #tpu.memory_space<vmem>>, vector<1x128xf32>
    %10 = arith.truncf %8 : vector<8x256xf32> to vector<8x256xbf16>
    %c0_7 = arith.constant 0 : index
    %c0_8 = arith.constant 0 : index
    %11 = vector.load %arg2[%c0_7, %c0_8] : memref<256x128xbf16, #tpu.memory_space<vmem>>, vector<256x128xbf16>
    %cst_9 = arith.constant dense<0.000000e+00> : vector<8x128xf32>
    %12 = tpu.matmul %10, %11, %cst_9 {dimension_numbers = #tpu.dot_dimension_numbers<[1], [0], [0], [1], [0, 0, 1, 1], [], []>} : vector<8x256xbf16>, vector<256x128xbf16>, vector<8x128xf32> -> vector<8x128xf32>
    %13 = vector.broadcast %9 : vector<1x128xf32> to vector<8x128xf32>
    %14 = arith.addf %12, %13 : vector<8x128xf32>
    %cst_10 = arith.constant 0.000000e+00 : f32
    %15 = vector.broadcast %cst_10 : f32 to vector<8x128xf32>
    %16 = arith.maximumf %14, %15 : vector<8x128xf32>
    %c2 = arith.constant 2 : index
    %c0_11 = arith.constant 0 : index
    %17 = vector.load %arg6[%c2, %c0_11] : memref<8x256xf32, #tpu.memory_space<vmem>>, vector<1x64xf32>
    %18 = arith.truncf %16 : vector<8x128xf32> to vector<8x128xbf16>
    %c0_12 = arith.constant 0 : index
    %c0_13 = arith.constant 0 : index
    %19 = vector.load %arg3[%c0_12, %c0_13] : memref<128x64xbf16, #tpu.memory_space<vmem>>, vector<128x64xbf16>
    %cst_14 = arith.constant dense<0.000000e+00> : vector<8x64xf32>
    %20 = tpu.matmul %18, %19, %cst_14 {dimension_numbers = #tpu.dot_dimension_numbers<[1], [0], [0], [1], [0, 0, 1, 1], [], []>} : vector<8x128xbf16>, vector<128x64xbf16>, vector<8x64xf32> -> vector<8x64xf32>
    %21 = vector.broadcast %17 : vector<1x64xf32> to vector<8x64xf32>
    %22 = arith.addf %20, %21 : vector<8x64xf32>
    %cst_15 = arith.constant 0.000000e+00 : f32
    %23 = vector.broadcast %cst_15 : f32 to vector<8x64xf32>
    %24 = arith.maximumf %22, %23 : vector<8x64xf32>
    %c3 = arith.constant 3 : index
    %c0_16 = arith.constant 0 : index
    %25 = vector.load %arg6[%c3, %c0_16] : memref<8x256xf32, #tpu.memory_space<vmem>>, vector<1x32xf32>
    %26 = arith.truncf %24 : vector<8x64xf32> to vector<8x64xbf16>
    %c0_17 = arith.constant 0 : index
    %c0_18 = arith.constant 0 : index
    %27 = vector.load %arg4[%c0_17, %c0_18] : memref<64x32xbf16, #tpu.memory_space<vmem>>, vector<64x32xbf16>
    %cst_19 = arith.constant dense<0.000000e+00> : vector<8x32xf32>
    %28 = tpu.matmul %26, %27, %cst_19 {dimension_numbers = #tpu.dot_dimension_numbers<[1], [0], [0], [1], [0, 0, 1, 1], [], []>} : vector<8x64xbf16>, vector<64x32xbf16>, vector<8x32xf32> -> vector<8x32xf32>
    %29 = vector.broadcast %25 : vector<1x32xf32> to vector<8x32xf32>
    %30 = arith.addf %28, %29 : vector<8x32xf32>
    %cst_20 = arith.constant 0.000000e+00 : f32
    %31 = vector.broadcast %cst_20 : f32 to vector<8x32xf32>
    %32 = arith.maximumf %30, %31 : vector<8x32xf32>
    %c4 = arith.constant 4 : index
    %c0_21 = arith.constant 0 : index
    %33 = vector.load %arg6[%c4, %c0_21] : memref<8x256xf32, #tpu.memory_space<vmem>>, vector<1x1xf32>
    %34 = arith.truncf %32 : vector<8x32xf32> to vector<8x32xbf16>
    %c0_22 = arith.constant 0 : index
    %c0_23 = arith.constant 0 : index
    %35 = vector.load %arg5[%c0_22, %c0_23] : memref<32x1xbf16, #tpu.memory_space<vmem>>, vector<32x1xbf16>
    %cst_24 = arith.constant dense<0.000000e+00> : vector<8x1xf32>
    %36 = tpu.matmul %34, %35, %cst_24 {dimension_numbers = #tpu.dot_dimension_numbers<[1], [0], [0], [1], [0, 0, 1, 1], [], []>} : vector<8x32xbf16>, vector<32x1xbf16>, vector<8x1xf32> -> vector<8x1xf32>
    %37 = vector.broadcast %33 : vector<1x1xf32> to vector<8x1xf32>
    %38 = arith.addf %36, %37 : vector<8x1xf32>
    %cst_25 = arith.constant 0.000000e+00 : f32
    %39 = vector.broadcast %cst_25 : f32 to vector<8x1xf32>
    %40 = arith.subf %39, %38 : vector<8x1xf32>
    %41 = math.exp %40 : vector<8x1xf32>
    %cst_26 = arith.constant 1.000000e+00 : f32
    %42 = vector.broadcast %cst_26 : f32 to vector<8x1xf32>
    %43 = arith.addf %42, %41 : vector<8x1xf32>
    %cst_27 = arith.constant 1.000000e+00 : f32
    %44 = vector.broadcast %cst_27 : f32 to vector<8x1xf32>
    %45 = arith.divf %44, %43 : vector<8x1xf32>
    %c0_28 = arith.constant 0 : index
    %c0_29 = arith.constant 0 : index
    %46 = vector.load %arg7[%c0_28, %c0_29] : memref<8x1xf32, #tpu.memory_space<vmem>>, vector<8x1xf32>
    tpu.vector_store %arg7[%c0_28, %c0_29], %45 {strides = array<i32>} : memref<8x1xf32, #tpu.memory_space<vmem>>, vector<8x1xf32>,
    return
  }
}

</mosaic_0001>

<bundles_post_ra>
// kernel: tpu_custom_call.1
= control target key start
LH: loop header
LB: loop body
LE: loop exit
PB: predicated region body
PF: predicated region fallthrough
CT: control target
= control target key end

     0   :  { %12 = vsyncpa [#allocation3], 0  ;;  %s2029_s0 = inlined_call_operand.hbm [shape: f32[8,896], index: 0, kind: input, shape index: {}]   ;;  %s2030_s1 = inlined_call_operand.hbm [shape: bf16[896,256], index: 1, kind: input, shape index: {}]   ;;  %s2031_s2 = inlined_call_operand.vmem [shape: bf16[256,128], index: 2, kind: input, shape index: {}]   ;;  %s2032_s3 = inlined_call_operand.vmem [shape: bf16[128,64], index: 3, kind: input, shape index: {}]   ;;  %s2033_s4 = inlined_call_operand.vmem [shape: bf16[64,32], index: 4, kind: input, shape index: {}]   ;;  %s2034_s5 = inlined_call_operand.vmem [shape: bf16[32,1], index: 5, kind: input, shape index: {}]   ;;  %s2035_s6 = inlined_call_operand.hbm [shape: f32[8,256], index: 6, kind: input, shape index: {}]   ;;  %s2036_s7 = inlined_call_operand.vmem [shape: f32[8,1], index: 7, kind: output, shape index: {}]  }
   0x1   :  { %13 = vsyncpa [#allocation5], 0  ;;  %s1859_s24 = smov [#allocation4]  }
   0x2   :  { %s29_s25 = sshll.u32 %s1859_s24, 4  ;;  %s30_s25 = int_to_ptr.vmem [resolvable:$true] %s29_s25 }
   0x3   :  { %s1803_s26 = scalar_lea.vmem %s30_s25, 14336  ;;  %p1808_p1 = scmp.lt.s32.totalorder %s30_s25, %s30_s25 }
   0x4   :  { %p1804_p0 = scmp.ne.s32.totalorder %s30_s25, %s1803_s26  ;;  %p1809_p2 = scmp.lt.s32.totalorder %s1803_s26, %s1803_s26 }
   0x6   :  { %p1810_p3 = por %p1809_p2, %p1808_p1 }
   0x8   :  { %p1811_p4 = pnand %p1810_p3, %p1804_p0 }
   0xa   :  { %1814 = shalt.err (!%p1811_p4)
}
   0xb   :  { %s1860_s27 = smov 128   ;;  %s1861_s28 = smov 8  }
   0xc   :  { %35 = dma.hbm_to_vmem [thread:$0]  %s2030_s1, 14336, %s30_s25, [#allocation5], %s1860_s27, %s1860_s27, %s1861_s28  }
   0xd   :  { %s1862_s8 = smov [#allocation2]   ;;  %s1863_s10 = smov [#allocation6]  }
   0xe   :  { %s20_s9 = sshll.u32 %s1862_s8, 4  ;;  %s50_s11 = sshll.u32 %s1863_s10, 4  ;;  %s21_s9 = int_to_ptr.vmem [resolvable:$true] %s20_s9  ;;  %s51_s11 = int_to_ptr.vmem [resolvable:$true] %s50_s11 }
   0xf   :  { %s1823_s12 = scalar_lea.vmem %s21_s9, 896  ;;  %p1828_p6 = scmp.lt.s32.totalorder %s21_s9, %s21_s9 }
  0x10   :  { %p1824_p5 = scmp.ne.s32.totalorder %s21_s9, %s1823_s12  ;;  %p1829_p7 = scmp.lt.s32.totalorder %s1823_s12, %s1823_s12 }
  0x12   :  { %p1830_p8 = por %p1829_p7, %p1828_p6 }
  0x14   :  { %p1831_p9 = pnand %p1830_p8, %p1824_p5 }
  0x16   :  { %1834 = shalt.err (!%p1831_p9)
}
  0x17   :  { %23 = dma.hbm_to_vmem [thread:$0]  %s2029_s0, 896, %s21_s9, [#allocation3]  }
  0x18   :  { %s1843_s15 = scalar_lea.vmem %s51_s11, 256  ;;  %p1848_p11 = scmp.lt.s32.totalorder %s51_s11, %s51_s11 }
  0x19   :  { %p1844_p10 = scmp.ne.s32.totalorder %s51_s11, %s1843_s15  ;;  %p1849_p12 = scmp.lt.s32.totalorder %s1843_s15, %s1843_s15 }
  0x1b   :  { %p1850_p13 = por %p1849_p12, %p1848_p11 }
  0x1d   :  { %p1851_p0 = pnand %p1850_p13, %p1844_p10 }
  0x1f   :  { %1854 = shalt.err (!%p1851_p0)
}
  0x20   :  { %53 = dma.hbm_to_vmem [thread:$0]  %s2035_s6, 256, %s51_s11, [#allocation5]  }
  0x21   :  { %1855 = dma.done.wait [#allocation3], 896  }
  0x22   :  { %1856 = vsyncadd [#allocation3], 4294966400 }
  0x23   :  { %1857 = dma.done.wait [#allocation5], 14592  }
  0x24   :  { %1858 = vsyncadd [#allocation5], 4294952704  ;;  %v1593_v0 = vld [vmem:[#allocation4 + $0x74] ss:$8 sps:$4 sm:$0xff]   ;;  %v1595_v1 = vld [vmem:[#allocation4 + $0x70] ss:$8 sps:$4 sm:$0xff]  }
  0x25   :  { %762 = vmatprep.subr.bf16.mxu0 %v1593_v0  ;;  %v1596_v2 = vld [vmem:[#allocation4 + $0x174] ss:$8 sps:$4 sm:$0xff]   ;;  %v1598_v3 = vld [vmem:[#allocation4 + $0x170] ss:$8 sps:$4 sm:$0xff]   ;;  %v1599_v4 = vld [vmem:[#allocation4 + $0x64] ss:$8 sps:$4 sm:$0xff]  }
  0x26   :  { %763 = vmatpush1.bf16.msra.mxu0 %v1595_v1  ;;  %v1601_v5 = vld [vmem:[#allocation4 + $0x60] ss:$8 sps:$4 sm:$0xff]   ;;  %803 = vmatprep.subr.bf16.mxu1 %v1596_v2  ;;  %v1602_v6 = vld [vmem:[#allocation4 + $0x164] ss:$8 sps:$4 sm:$0xff]   ;;  %v1605_v8 = vld [vmem:[#allocation4 + $0x54] ss:$8 sps:$4 sm:$0xff]  }
  0x27   :  { %804 = vmatpush1.bf16.msra.mxu1 %v1598_v3  ;;  %764 = vmatprep.subr.bf16.mxu0 %v1599_v4  ;;  %v1604_v7 = vld [vmem:[#allocation4 + $0x160] ss:$8 sps:$4 sm:$0xff]   ;;  %v1607_v9 = vld [vmem:[#allocation4 + $0x50] ss:$8 sps:$4 sm:$0xff]   ;;  %v1608_v10 = vld [vmem:[#allocation4 + $0x154] ss:$8 sps:$4 sm:$0xff]  }
  0x28   :  { %805 = vmatprep.subr.bf16.mxu1 %v1602_v6  ;;  %v1611_v11 = vld [vmem:[#allocation4 + $0x44] ss:$8 sps:$4 sm:$0xff]   ;;  %v1610_v12 = vld [vmem:[#allocation4 + $0x150] ss:$8 sps:$4 sm:$0xff]   ;;  %v1613_v14 = vld [vmem:[#allocation4 + $0x40] ss:$8 sps:$4 sm:$0xff]  }
  0x29   :  { %v1614_v13 = vld [vmem:[#allocation4 + $0x144] ss:$8 sps:$4 sm:$0xff]   ;;  %v1617_v15 = vld [vmem:[#allocation4 + $0x34] ss:$8 sps:$4 sm:$0xff]   ;;  %v1616_v16 = vld [vmem:[#allocation4 + $0x140] ss:$8 sps:$4 sm:$0xff]  }
  0x2a   :  { %765 = vmatpush1.bf16.msra.mxu0 %v1601_v5  ;;  %v1620_v17 = vld [vmem:[#allocation4 + $0x134] ss:$8 sps:$4 sm:$0xff]   ;;  %v1619_v18 = vld [vmem:[#allocation4 + $0x30] ss:$8 sps:$4 sm:$0xff]   ;;  %v1623_v19 = vld [vmem:[#allocation4 + $0x24] ss:$8 sps:$4 sm:$0xff]  }
  0x2b   :  { %766 = vmatprep.subr.bf16.mxu0 %v1605_v8  ;;  %806 = vmatpush1.bf16.msra.mxu1 %v1604_v7  ;;  %v1622_v20 = vld [vmem:[#allocation4 + $0x130] ss:$8 sps:$4 sm:$0xff]   ;;  %v1626_v21 = vld [vmem:[#allocation4 + $0x124] ss:$8 sps:$4 sm:$0xff]   ;;  %v1625_v22 = vld [vmem:[#allocation4 + $0x20] ss:$8 sps:$4 sm:$0xff]  }
  0x2c   :  { %807 = vmatprep.subr.bf16.mxu1 %v1608_v10  ;;  %v1629_v23 = vld [vmem:[#allocation4 + $0x14] ss:$8 sps:$4 sm:$0xff]   ;;  %v1628_v24 = vld [vmem:[#allocation4 + $0x120] ss:$8 sps:$4 sm:$0xff]   ;;  %v1631_v26 = vld [vmem:[#allocation4 + $0x10] ss:$8 sps:$4 sm:$0xff]  }
  0x2d   :  { %v1632_v25 = vld [vmem:[#allocation4 + $0x114] ss:$8 sps:$4 sm:$0xff]   ;;  %v1635_v27 = vld [vmem:[#allocation4 + $0x4] ss:$8 sps:$4 sm:$0xff]   ;;  %v1634_v28 = vld [vmem:[#allocation4 + $0x110] ss:$8 sps:$4 sm:$0xff]  }
  0x2e   :  { %767 = vmatpush1.bf16.msra.mxu0 %v1607_v9  ;;  %v1638_v29 = vld [vmem:[#allocation4 + $0x104] ss:$8 sps:$4 sm:$0xff]   ;;  %v1637_v30 = vld [vmem:[#allocation4] ss:$8 sps:$4 sm:$0xff]   ;;  %v1641_v31 = vld [vmem:[#allocation4 + $0xf4] ss:$8 sps:$4 sm:$0xff]  }
  0x2f   :  { %768 = vmatprep.subr.bf16.mxu0 %v1611_v11  ;;  %808 = vmatpush1.bf16.msra.mxu1 %v1610_v12  ;;  %v1640_v32 = vld [vmem:[#allocation4 + $0x100] ss:$8 sps:$4 sm:$0xff]   ;;  %v1644_v33 = vld [vmem:[#allocation4 + $0x1f4] ss:$8 sps:$4 sm:$0xff]   ;;  %v1643_v34 = vld [vmem:[#allocation4 + $0xf0] ss:$8 sps:$4 sm:$0xff]  }
  0x30   :  { %809 = vmatprep.subr.bf16.mxu1 %v1614_v13  ;;  %v1647_v35 = vld [vmem:[#allocation4 + $0xe4] ss:$8 sps:$4 sm:$0xff]   ;;  %v1646_v36 = vld [vmem:[#allocation4 + $0x1f0] ss:$8 sps:$4 sm:$0xff]   ;;  %v1649_v38 = vld [vmem:[#allocation4 + $0xe0] ss:$8 sps:$4 sm:$0xff]  }
  0x31   :  { %v1650_v37 = vld [vmem:[#allocation4 + $0x1e4] ss:$8 sps:$4 sm:$0xff]   ;;  %v1653_v39 = vld [vmem:[#allocation4 + $0xd4] ss:$8 sps:$4 sm:$0xff]   ;;  %v1652_v40 = vld [vmem:[#allocation4 + $0x1e0] ss:$8 sps:$4 sm:$0xff]  }
  0x32   :  { %769 = vmatpush1.bf16.msra.mxu0 %v1613_v14  ;;  %v1656_v41 = vld [vmem:[#allocation4 + $0x1d4] ss:$8 sps:$4 sm:$0xff]   ;;  %v1655_v42 = vld [vmem:[#allocation4 + $0xd0] ss:$8 sps:$4 sm:$0xff]   ;;  %v1659_v43 = vld [vmem:[#allocation4 + $0xc4] ss:$8 sps:$4 sm:$0xff]  }
  0x33   :  { %770 = vmatprep.subr.bf16.mxu0 %v1617_v15  ;;  %810 = vmatpush1.bf16.msra.mxu1 %v1616_v16  ;;  %v1658_v44 = vld [vmem:[#allocation4 + $0x1d0] ss:$8 sps:$4 sm:$0xff]   ;;  %v1662_v45 = vld [vmem:[#allocation4 + $0x1c4] ss:$8 sps:$4 sm:$0xff]   ;;  %v1661_v47 = vld [vmem:[#allocation4 + $0xc0] ss:$8 sps:$4 sm:$0xff]  }
  0x34   :  { %811 = vmatprep.subr.bf16.mxu1 %v1620_v17  ;;  %v65_v46 = vld [vmem:[#allocation2 + $0x8] sm:$0xff]  ;;  %v67_v50 = vld [vmem:[#allocation2 + $0x18] sm:$0xff]  ;;  %v64_v4 = vld [vmem:[#allocation2] sm:$0xff]  ;;  %v1864_v17 = vmov 0   ;;  %vm1866_vm0 = vmmov 0   ;;  %vm1241_vm1 = vcmask 523264  }
  0x35   :  { %v73_v48 = vpack.c.bf16 %v65_v46, %v65_v46  ;;  %v1665_v49 = vld [vmem:[#allocation4 + $0xb4] ss:$8 sps:$4 sm:$0xff]   ;;  %v1664_v51 = vld [vmem:[#allocation4 + $0x1c0] ss:$8 sps:$4 sm:$0xff]   ;;  %v75_v52 = vpack.c.bf16 %v67_v50, %v67_v50  ;;  %v1667_v54 = vld [vmem:[#allocation4 + $0xb0] ss:$8 sps:$4 sm:$0xff]   ;;  %v72_v7 = vpack.c.bf16 %v64_v4, %v64_v4 }
  0x36   :  { %771 = vmatpush1.bf16.msra.mxu0 %v1619_v18  ;;  %v1668_v53 = vld [vmem:[#allocation4 + $0x1b4] ss:$8 sps:$4 sm:$0xff]   ;;  %v1671_v55 = vld [vmem:[#allocation4 + $0xa4] ss:$8 sps:$4 sm:$0xff]   ;;  %v1670_v56 = vld [vmem:[#allocation4 + $0x1b0] ss:$8 sps:$4 sm:$0xff]  }
  0x37   :  { %772 = vmatprep.subr.bf16.mxu0 %v1623_v19  ;;  %812 = vmatpush1.bf16.msra.mxu1 %v1622_v20  ;;  %v1674_v57 = vld [vmem:[#allocation4 + $0x1a4] ss:$8 sps:$4 sm:$0xff]   ;;  %v1673_v58 = vld [vmem:[#allocation4 + $0xa0] ss:$8 sps:$4 sm:$0xff]   ;;  %v1677_v59 = vld [vmem:[#allocation4 + $0x94] ss:$8 sps:$4 sm:$0xff]  }
  0x38   :  { %813 = vmatprep.subr.bf16.mxu1 %v1626_v21  ;;  %794 = vmatprep.mubr.bf16.mxu0 %v73_v48  ;;  %v1676_v60 = vld [vmem:[#allocation4 + $0x1a0] ss:$8 sps:$4 sm:$0xff]   ;;  %v1680_v61 = vld [vmem:[#allocation4 + $0x194] ss:$8 sps:$4 sm:$0xff]   ;;  %v1679_v62 = vld [vmem:[#allocation4 + $0x90] ss:$8 sps:$4 sm:$0xff]  }
  0x39   :  { %835 = vmatprep.mubr.bf16.mxu1 %v75_v52  ;;  %v1683_v63 = vld [vmem:[#allocation4 + $0x84] ss:$8 sps:$4 sm:$0xff]   ;;  %v1682_v0 = vld [vmem:[#allocation4 + $0x190] ss:$8 sps:$4 sm:$0xff]   ;;  %v1685_v1 = vld [vmem:[#allocation4 + $0x80] ss:$8 sps:$4 sm:$0xff]  }
  0x3a   :  { %773 = vmatpush1.bf16.msra.mxu0 %v1625_v22  ;;  %v1686_v2 = vld [vmem:[#allocation4 + $0x184] ss:$8 sps:$4 sm:$0xff]   ;;  %v1688_v3 = vld [vmem:[#allocation4 + $0x180] ss:$8 sps:$4 sm:$0xff]   ;;  %v1691_v5 = vld [vmem:[#allocation4 + $0x274] ss:$8 sps:$4 sm:$0xff]  }
  0x3b   :  { %774 = vmatprep.subr.bf16.mxu0 %v1629_v23  ;;  %814 = vmatpush1.bf16.msra.mxu1 %v1628_v24  ;;  %v66_v6 = vld [vmem:[#allocation2 + $0x10] sm:$0xff]  ;;  %v1694_v11 = vld [vmem:[#allocation4 + $0x264] ss:$8 sps:$4 sm:$0xff]   ;;  %v1692_v14 = vld [vmem:[#allocation4 + $0x260] ss:$8 sps:$4 sm:$0xff]   ;;  %vm1304_vm2 = vcmask 261120  }
  0x3c   :  { %815 = vmatprep.subr.bf16.mxu1 %v1632_v25  ;;  %v1715_v8 = vld [vmem:[#allocation4 + $0x374] ss:$8 sps:$4 sm:$0xff]   ;;  %v1689_v9 = vld [vmem:[#allocation4 + $0x270] ss:$8 sps:$4 sm:$0xff]   ;;  %v74_v10 = vpack.c.bf16 %v66_v6, %v66_v6  ;;  %v1721_v13 = vld [vmem:[#allocation4 + $0x364] ss:$8 sps:$4 sm:$0xff]  }
  0x3d   :  { %v1713_v12 = vld [vmem:[#allocation4 + $0x370] ss:$8 sps:$4 sm:$0xff]   ;;  %v1697_v15 = vld [vmem:[#allocation4 + $0x254] ss:$8 sps:$4 sm:$0xff]   ;;  %v1719_v16 = vld [vmem:[#allocation4 + $0x360] ss:$8 sps:$4 sm:$0xff]  }
  0x3e   :  { %775 = vmatpush1.bf16.msra.mxu0 %v1631_v26  ;;  %v1727_v18 = vld [vmem:[#allocation4 + $0x354] ss:$8 sps:$4 sm:$0xff]   ;;  %v1695_v19 = vld [vmem:[#allocation4 + $0x250] ss:$8 sps:$4 sm:$0xff]   ;;  %v1700_v20 = vld [vmem:[#allocation4 + $0x244] ss:$8 sps:$4 sm:$0xff]  }
  0x3f   :  { %776 = vmatprep.subr.bf16.mxu0 %v1635_v27  ;;  %816 = vmatpush1.bf16.msra.mxu1 %v1634_v28  ;;  %v1725_v21 = vld [vmem:[#allocation4 + $0x350] ss:$8 sps:$4 sm:$0xff]   ;;  %v1733_v22 = vld [vmem:[#allocation4 + $0x344] ss:$8 sps:$4 sm:$0xff]   ;;  %v1698_v23 = vld [vmem:[#allocation4 + $0x240] ss:$8 sps:$4 sm:$0xff]  }
  0x40   :  { %817 = vmatprep.subr.bf16.mxu1 %v1638_v29  ;;  %v1703_v24 = vld [vmem:[#allocation4 + $0x234] ss:$8 sps:$4 sm:$0xff]   ;;  %v1701_v26 = vld [vmem:[#allocation4 + $0x230] ss:$8 sps:$4 sm:$0xff]   ;;  %v1731_v27 = vld [vmem:[#allocation4 + $0x340] ss:$8 sps:$4 sm:$0xff]  }
  0x41   :  { %v69_v25 = vld [vmem:[#allocation2 + $0x28] sm:$0xff]  ;;  %v1724_v46 = vld [vmem:[#allocation4 + $0x2e4] ss:$8 sps:$4 sm:$0xff]   ;;  %v1722_v48 = vld [vmem:[#allocation4 + $0x2e0] ss:$8 sps:$4 sm:$0xff]   ;;  %vm1354_vm3 = vcmask 7168  }
  0x42   :  { %777 = vmatpush1.bf16.msra.mxu0 %v1637_v30  ;;  %v1739_v28 = vld [vmem:[#allocation4 + $0x334] ss:$8 sps:$4 sm:$0xff]   ;;  %v77_v29 = vpack.c.bf16 %v69_v25, %v69_v25  ;;  %v1706_v30 = vld [vmem:[#allocation4 + $0x224] ss:$8 sps:$4 sm:$0xff]   ;;  %v1728_v50 = vld [vmem:[#allocation4 + $0x2d0] ss:$8 sps:$4 sm:$0xff]  }
  0x43   :  { %778 = vmatprep.subr.bf16.mxu0 %v1641_v31  ;;  %818 = vmatpush1.bf16.msra.mxu1 %v1640_v32  ;;  %v1737_v31 = vld [vmem:[#allocation4 + $0x330] ss:$8 sps:$4 sm:$0xff]   ;;  %v1745_v32 = vld [vmem:[#allocation4 + $0x324] ss:$8 sps:$4 sm:$0xff]   ;;  %v1734_v52 = vld [vmem:[#allocation4 + $0x2c0] ss:$8 sps:$4 sm:$0xff]  }
  0x44   :  { %819 = vmatprep.subr.bf16.mxu1 %v1644_v33  ;;  %v1704_v33 = vld [vmem:[#allocation4 + $0x220] ss:$8 sps:$4 sm:$0xff]   ;;  %v1766_v4 = vld [vmem:[%s2031_s2 + $0x28] sm:$0xff]  }
  0x45   :  { %v1768_v6 = vld [vmem:[%s2031_s2 + $0x20] sm:$0xff]  }
  0x46   :  { %779 = vmatpush2.bf16.msra.mxu0 %v1643_v34  ;;  %v1709_v34 = vld [vmem:[#allocation4 + $0x214] ss:$8 sps:$4 sm:$0xff]  }
  0x47   :  { %780 = vmatprep.subr.bf16.mxu0 %v1647_v35  ;;  %820 = vmatpush2.bf16.msra.mxu1 %v1646_v36  ;;  %v1743_v35 = vld [vmem:[#allocation4 + $0x320] ss:$8 sps:$4 sm:$0xff]   ;;  %v1751_v36 = vld [vmem:[#allocation4 + $0x314] ss:$8 sps:$4 sm:$0xff]  }
  0x48   :  { %821 = vmatprep.subr.bf16.mxu1 %v1650_v37  ;;  %v1707_v37 = vld [vmem:[#allocation4 + $0x210] ss:$8 sps:$4 sm:$0xff]  }
  0x4a   :  { %781 = vmatpush2.bf16.msra.mxu0 %v1649_v38  ;;  %v1712_v38 = vld [vmem:[#allocation4 + $0x204] ss:$8 sps:$4 sm:$0xff]  }
  0x4b   :  { %782 = vmatprep.subr.bf16.mxu0 %v1653_v39  ;;  %822 = vmatpush2.bf16.msra.mxu1 %v1652_v40  ;;  %v1749_v39 = vld [vmem:[#allocation4 + $0x310] ss:$8 sps:$4 sm:$0xff]   ;;  %v1757_v40 = vld [vmem:[#allocation4 + $0x304] ss:$8 sps:$4 sm:$0xff]  }
  0x4c   :  { %823 = vmatprep.subr.bf16.mxu1 %v1656_v41  ;;  %v1710_v41 = vld [vmem:[#allocation4 + $0x200] ss:$8 sps:$4 sm:$0xff]  }
  0x4e   :  { %783 = vmatpush2.bf16.msra.mxu0 %v1655_v42  ;;  %v1718_v42 = vld [vmem:[#allocation4 + $0x2f4] ss:$8 sps:$4 sm:$0xff]  }
  0x4f   :  { %784 = vmatprep.subr.bf16.mxu0 %v1659_v43  ;;  %824 = vmatpush2.bf16.msra.mxu1 %v1658_v44  ;;  %v1755_v43 = vld [vmem:[#allocation4 + $0x300] ss:$8 sps:$4 sm:$0xff]   ;;  %v70_v44 = vld [vmem:[#allocation2 + $0x30] sm:$0xff] }
  0x50   :  { %825 = vmatprep.subr.bf16.mxu1 %v1662_v45  ;;  %v1716_v45 = vld [vmem:[#allocation4 + $0x2f0] ss:$8 sps:$4 sm:$0xff]  }
  0x52   :  { %785 = vmatpush2.bf16.msra.mxu0 %v1661_v47  ;;  %v78_v47 = vpack.c.bf16 %v70_v44, %v70_v44 }
  0x53   :  { %786 = vmatprep.subr.bf16.mxu0 %v1665_v49  ;;  %826 = vmatpush2.bf16.msra.mxu1 %v1664_v51  ;;  %v1730_v49 = vld [vmem:[#allocation4 + $0x2d4] ss:$8 sps:$4 sm:$0xff]   ;;  %v1736_v51 = vld [vmem:[#allocation4 + $0x2c4] ss:$8 sps:$4 sm:$0xff]  }
  0x54   :  { %827 = vmatprep.subr.bf16.mxu1 %v1668_v53  ;;  %v1742_v53 = vld [vmem:[#allocation4 + $0x2b4] ss:$8 sps:$4 sm:$0xff]  }
  0x56   :  { %787 = vmatpush2.bf16.msra.mxu0 %v1667_v54  ;;  %v1740_v54 = vld [vmem:[#allocation4 + $0x2b0] ss:$8 sps:$4 sm:$0xff]  }
  0x57   :  { %788 = vmatprep.subr.bf16.mxu0 %v1671_v55  ;;  %828 = vmatpush2.bf16.msra.mxu1 %v1670_v56  ;;  %v1748_v55 = vld [vmem:[#allocation4 + $0x2a4] ss:$8 sps:$4 sm:$0xff]   ;;  %v1746_v56 = vld [vmem:[#allocation4 + $0x2a0] ss:$8 sps:$4 sm:$0xff]  }
  0x58   :  { %829 = vmatprep.subr.bf16.mxu1 %v1674_v57  ;;  %v1754_v57 = vld [vmem:[#allocation4 + $0x294] ss:$8 sps:$4 sm:$0xff]  }
  0x5a   :  { %789 = vmatpush2.bf16.msra.mxu0 %v1673_v58  ;;  %v1752_v58 = vld [vmem:[#allocation4 + $0x290] ss:$8 sps:$4 sm:$0xff]  }
  0x5b   :  { %790 = vmatprep.subr.bf16.mxu0 %v1677_v59  ;;  %830 = vmatpush2.bf16.msra.mxu1 %v1676_v60  ;;  %v1760_v59 = vld [vmem:[#allocation4 + $0x284] ss:$8 sps:$4 sm:$0xff]   ;;  %v1758_v60 = vld [vmem:[#allocation4 + $0x280] ss:$8 sps:$4 sm:$0xff]  }
  0x5c   :  { %831 = vmatprep.subr.bf16.mxu1 %v1680_v61  ;;  %v68_v61 = vld [vmem:[#allocation2 + $0x20] sm:$0xff] }
  0x5e   :  { %791 = vmatpush2.bf16.msra.mxu0 %v1679_v62  ;;  %v76_v62 = vpack.c.bf16 %v68_v61, %v68_v61 }
  0x5f   :  { %792 = vmatprep.subr.bf16.mxu0 %v1683_v63  ;;  %832 = vmatpush2.bf16.msra.mxu1 %v1682_v0  ;;  %v1761_v63 = vld [vmem:[%s2031_s2 + $0x78] sm:$0xff]  }
  0x60   :  { %833 = vmatprep.subr.bf16.mxu1 %v1686_v2  ;;  %v1762_v0 = vld [vmem:[%s2031_s2 + $0x38] sm:$0xff]   ;;  %v1764_v2 = vld [vmem:[%s2031_s2 + $0x30] sm:$0xff]  }
  0x62   :  { %793 = vmatpush2.bf16.msra.mxu0 %v1685_v1  ;;  %v1763_v1 = vld [vmem:[%s2031_s2 + $0x70] sm:$0xff]  }
  0x63   :  { %844 = vmatprep.subr.bf16.mxu0 %v1691_v5  ;;  %834 = vmatpush2.bf16.msra.mxu1 %v1688_v3  ;;  %v1765_v3 = vld [vmem:[%s2031_s2 + $0x68] sm:$0xff]   ;;  %v1767_v5 = vld [vmem:[%s2031_s2 + $0x60] sm:$0xff]  }
  0x64   :  { %885 = vmatprep.subr.bf16.mxu1 %v1715_v8  ;;  %v1770_v8 = vld [vmem:[%s2031_s2 + $0x18] sm:$0xff]  }
  0x65   :  { %795 = vmatmul.mubr.bf16.vlgmr.msra.gmra.mxu0 %v72_v7  ;;  %v1769_v7 = vld [vmem:[%s2031_s2 + $0x58] sm:$0xff]  }
  0x66   :  { %845 = vmatpush1.bf16.msra.mxu0 %v1689_v9  ;;  %836 = vmatmul.mubr.bf16.vlgmr.msra.gmra.mxu1 %v74_v10  ;;  %v1771_v9 = vld [vmem:[%s2031_s2 + $0x50] sm:$0xff]  }
  0x67   :  { %846 = vmatprep.subr.bf16.mxu0 %v1694_v11  ;;  %886 = vmatpush1.bf16.msra.mxu1 %v1713_v12  ;;  %v1772_v10 = vld [vmem:[%s2031_s2 + $0x10] sm:$0xff]   ;;  %v1773_v11 = vld [vmem:[%s2031_s2 + $0x48] sm:$0xff]  }
  0x68   :  { %917 = vmatprep.mubr.bf16.mxu1 %v1864_v17  ;;  %887 = vmatprep.subr.bf16.mxu1 %v1721_v13  ;;  %v1774_v12 = vld [vmem:[%s2031_s2 + $0x8] sm:$0xff]   ;;  %v1775_v13 = vld [vmem:[%s2031_s2 + $0x40] sm:$0xff]   ;;  %v1778_v17 = vld [vmem:[%s2032_s3 + $0x30] sm:$0xff]  }
  0x69   :  { %876 = vmatprep.mubr.bf16.mxu0 %v77_v29 }
  0x6a   :  { %847 = vmatpush1.bf16.msra.mxu0 %v1692_v14  ;;  %v1776_v14 = vld [vmem:[%s2031_s2] sm:$0xff]  }
  0x6b   :  { %848 = vmatprep.subr.bf16.mxu0 %v1697_v15  ;;  %888 = vmatpush1.bf16.msra.mxu1 %v1719_v16  ;;  %v1777_v15 = vld [vmem:[%s2032_s3 + $0x38] sm:$0xff]   ;;  %v1865_v16 = vmov 0.0  }
  0x6c   :  { %889 = vmatprep.subr.bf16.mxu1 %v1727_v18  ;;  %v1779_v18 = vld [vmem:[%s2032_s3 + $0x28] sm:$0xff]  }
  0x6e   :  { %849 = vmatpush1.bf16.msra.mxu0 %v1695_v19  ;;  %v1780_v19 = vld [vmem:[%s2032_s3 + $0x20] sm:$0xff]  }
  0x6f   :  { %850 = vmatprep.subr.bf16.mxu0 %v1700_v20  ;;  %890 = vmatpush1.bf16.msra.mxu1 %v1725_v21  ;;  %v1781_v20 = vld [vmem:[%s2032_s3 + $0x18] sm:$0xff]  }
  0x70   :  { %891 = vmatprep.subr.bf16.mxu1 %v1733_v22 }
  0x72   :  { %851 = vmatpush1.bf16.msra.mxu0 %v1698_v23 }
  0x73   :  { %852 = vmatprep.subr.bf16.mxu0 %v1703_v24  ;;  %892 = vmatpush1.bf16.msra.mxu1 %v1731_v27 }
  0x74   :  { %893 = vmatprep.subr.bf16.mxu1 %v1739_v28 }
  0x76   :  { %853 = vmatpush1.bf16.msra.mxu0 %v1701_v26 }
  0x77   :  { %854 = vmatprep.subr.bf16.mxu0 %v1706_v30  ;;  %894 = vmatpush1.bf16.msra.mxu1 %v1737_v31 }
  0x78   :  { %895 = vmatprep.subr.bf16.mxu1 %v1745_v32 }
  0x7a   :  { %855 = vmatpush1.bf16.msra.mxu0 %v1704_v33  ;;  %v192_v33 = vlaneseq }
  0x7b   :  { %856 = vmatprep.subr.bf16.mxu0 %v1709_v34  ;;  %896 = vmatpush1.bf16.msra.mxu1 %v1743_v35 }
  0x7c   :  { %897 = vmatprep.subr.bf16.mxu1 %v1751_v36  ;;  %v193_v34 = vshrl.u32 %v192_v33, 7  ;;  %v71_v36 = vld [vmem:[#allocation6] ss:$8 sm:$0x3] }
  0x7e   :  { %857 = vmatpush1.bf16.msra.mxu0 %v1707_v37  ;;  %v194_v35 = vsub.s32 0, %v193_v34  ;;  %v198_v37 = vsub.s32 1, %v193_v34 }
  0x7f   :  { %858 = vmatprep.subr.bf16.mxu0 %v1712_v38  ;;  %898 = vmatpush1.bf16.msra.mxu1 %v1749_v39 }
  0x80   :  { %899 = vmatprep.subr.bf16.mxu1 %v1757_v40  ;;  %v195_v38 = vrot.slane %v71_v36, %v194_v35  ;;  %v199_v39 = vrot.slane %v71_v36, %v198_v37 }
  0x82   :  { %859 = vmatpush1.bf16.msra.mxu0 %v1710_v41 }
  0x83   :  { %860 = vmatprep.subr.bf16.mxu0 %v1718_v42  ;;  %900 = vmatpush1.bf16.msra.mxu1 %v1755_v43 }
  0x84   :  { %1506 = vmatprep.subr.bf16.mxu1 %v1761_v63 }
  0x86   :  { %861 = vmatpush2.bf16.msra.mxu0 %v1716_v45  ;;  %918 = vmatmul.mubr.bf16.vlgmr.msra.gmra.mxu1 %v78_v47 }
  0x87   :  { %862 = vmatprep.subr.bf16.mxu0 %v1724_v46  ;;  %1507 = vmatpush3.bf16.msra.mxu1 %v1762_v0 }
  0x88   :  { %1508 = vmatprep.subr.bf16.mxu1 %v1763_v1 }
  0x8a   :  { %863 = vmatpush2.bf16.msra.mxu0 %v1722_v48 }
  0x8b   :  { %864 = vmatprep.subr.bf16.mxu0 %v1730_v49  ;;  %1509 = vmatpush3.bf16.msra.mxu1 %v1764_v2 }
  0x8c   :  { %1510 = vmatprep.subr.bf16.mxu1 %v1765_v3 }
  0x8e   :  { %865 = vmatpush2.bf16.msra.mxu0 %v1728_v50 }
  0x8f   :  { %866 = vmatprep.subr.bf16.mxu0 %v1736_v51  ;;  %1511 = vmatpush3.bf16.msra.mxu1 %v1766_v4 }
  0x90   :  { %1512 = vmatprep.subr.bf16.mxu1 %v1767_v5 }
  0x92   :  { %867 = vmatpush2.bf16.msra.mxu0 %v1734_v52 }
  0x93   :  { %868 = vmatprep.subr.bf16.mxu0 %v1742_v53  ;;  %1513 = vmatpush3.bf16.msra.mxu1 %v1768_v6  ;;  %v1787_v6 = vld [vmem:[%s2033_s4 + $0x8] sm:$0xff]  }
  0x94   :  { %1514 = vmatprep.subr.bf16.mxu1 %v1769_v7  ;;  %v1788_v7 = vld [vmem:[%s2033_s4] sm:$0xff]  }
  0x96   :  { %869 = vmatpush2.bf16.msra.mxu0 %v1740_v54 }
  0x97   :  { %870 = vmatprep.subr.bf16.mxu0 %v1748_v55  ;;  %1515 = vmatpush3.bf16.msra.mxu1 %v1770_v8  ;;  %v1100_v8 = vld [vmem:[#allocation6 + $0x2] ss:$0 sm:$0xff] }
  0x98   :  { %1516 = vmatprep.subr.bf16.mxu1 %v1771_v9 }
  0x9a   :  { %871 = vmatpush2.bf16.msra.mxu0 %v1746_v56  ;;  %v1782_v56 = vld [vmem:[%s2032_s3 + $0x10] sm:$0xff]  }
  0x9b   :  { %872 = vmatprep.subr.bf16.mxu0 %v1754_v57  ;;  %1517 = vmatpush3.bf16.msra.mxu1 %v1772_v10  ;;  %v1783_v57 = vld [vmem:[%s2032_s3 + $0x8] sm:$0xff]  }
  0x9c   :  { %1518 = vmatprep.subr.bf16.mxu1 %v1773_v11 }
  0x9e   :  { %873 = vmatpush2.bf16.msra.mxu0 %v1752_v58  ;;  %v1784_v58 = vld [vmem:[%s2032_s3] sm:$0xff]  }
  0x9f   :  { %874 = vmatprep.subr.bf16.mxu0 %v1760_v59  ;;  %1519 = vmatpush3.bf16.msra.mxu1 %v1774_v12  ;;  %v1785_v59 = vld [vmem:[%s2033_s4 + $0x18] sm:$0xff]  }
  0xa0   :  { %1520 = vmatprep.subr.bf16.mxu1 %v1775_v13 }
  0xa2   :  { %875 = vmatpush2.bf16.msra.mxu0 %v1758_v60  ;;  %v1786_v60 = vld [vmem:[%s2033_s4 + $0x10] sm:$0xff]  }
  0xa3   :  { %1521 = vmatpush3.bf16.msra.mxu1 %v1776_v14  ;;  %1545 = vmatprep.subr.bf16.mxu0 %v1865_v16  ;;  %v1789_v14 = vld [vmem:[%s2034_s5 + $0x8] sm:$0xff]  }
  0xa4   :  { %1565 = vmatprep.subr.bf16.mxu1 %v1865_v16 }
  0xa5   :  { %877 = vmatmul.mubr.bf16.vlgmr.msra.gmra.mxu0 %v76_v62  ;;  %v928_v62 = vld [vmem:[#allocation6 + $0x1] ss:$0 sm:$0xff] }
  0xa6   :  { %1546 = vmatpush3.bf16.msra.mxu0 %v1777_v15  ;;  %1561 = vmatprep.mubr.msk.bf16.mxu0 %vm1866_vm0, %v1865_v16 }
  0xa7   :  { %1547 = vmatprep.subr.bf16.mxu0 %v1865_v16 }
  0xaa   :  { %1548 = vmatpush3.bf16.msra.mxu0 %v1778_v17 }
  0xab   :  { %1549 = vmatprep.subr.bf16.mxu0 %v1865_v16 }
  0xae   :  { %1550 = vmatpush3.bf16.msra.mxu0 %v1779_v18  ;;  %v1790_v18 = vld [vmem:[%s2034_s5] sm:$0xff]  }
  0xaf   :  { %1551 = vmatprep.subr.bf16.mxu0 %v1865_v16 }
  0xb2   :  { %1552 = vmatpush3.bf16.msra.mxu0 %v1780_v19  ;;  %v1207_v19 = vld [vmem:[#allocation6 + $0x3] ss:$0 sm:$0xff] }
  0xb3   :  { %1553 = vmatprep.subr.bf16.mxu0 %v1865_v16 }
  0xb6   :  { %1554 = vmatpush3.bf16.msra.mxu0 %v1781_v20 }
  0xb7   :  { %1555 = vmatprep.subr.bf16.mxu0 %v1865_v16 }
  0xba   :  { %1556 = vmatpush3.bf16.msra.mxu0 %v1782_v56 }
  0xbb   :  { %1557 = vmatprep.subr.bf16.mxu0 %v1865_v16 }
  0xbe   :  { %1558 = vmatpush3.bf16.msra.mxu0 %v1783_v57 }
  0xbf   :  { %1559 = vmatprep.subr.bf16.mxu0 %v1865_v16 }
  0xc2   :  { %1560 = vmatpush3.bf16.msra.mxu0 %v1784_v58 }
 0x125   :  { %v796_v21 = vpop.f32.mrf.mxu0 }
 0x126   :  { %v837_v23 = vpop.f32.mrf.mxu1  ;;  %v797_v40 = vadd.f32 %v796_v21, %v195_v38 }
 0x127   :  { %v798_v22 = vpop.f32.mrf.mxu0 }
 0x128   :  { %v839_v25 = vpop.f32.mrf.mxu1  ;;  %v799_v41 = vadd.f32 %v798_v22, %v199_v39  ;;  %v838_v42 = vadd.f32 %v837_v23, %v797_v40 }
 0x129   :  { %v800_v24 = vpop.f32.mrf.mxu0 }
 0x12a   :  { %v841_v27 = vpop.f32.mrf.mxu1  ;;  %v840_v44 = vadd.f32 %v839_v25, %v799_v41 }
 0x12b   :  { %v801_v26 = vpop.f32.mrf.mxu0  ;;  %v1286_v27 = vld [vmem:[#allocation6 + $0x4] ss:$0 sm:$0xff] }
 0x12c   :  { %v842_v28 = vpop.f32.mrf.mxu1 }
 0x146   :  { %v919_v29 = vpop.f32.mrf.mxu1 }
 0x148   :  { %v921_v30 = vpop.f32.mrf.mxu1 }
 0x14a   :  { %v923_v31 = vpop.f32.mrf.mxu1 }
 0x14c   :  { %v924_v32 = vpop.f32.mrf.mxu1 }
 0x165   :  { %v878_v43 = vpop.f32.mrf.mxu0 }
 0x166   :  { %v879_v45 = vadd.f32 %v878_v43, %v838_v42 }
 0x167   :  { %v880_v46 = vpop.f32.mrf.mxu0 }
 0x168   :  { %v920_v47 = vadd.f32 %v919_v29, %v879_v45  ;;  %v881_v48 = vadd.f32 %v880_v46, %v840_v44 }
 0x169   :  { %v882_v49 = vpop.f32.mrf.mxu0 }
 0x16a   :  { %v922_v50 = vadd.f32 %v921_v30, %v881_v48  ;;  %v926_v51 = vmax.f32 %v920_v47, 0.0 }
 0x16b   :  { %v883_v52 = vpop.f32.mrf.mxu0 }
 0x16c   :  { %v927_v53 = vmax.f32 %v922_v50, 0.0  ;;  %v929_v55 = vpack.c.bf16 %v926_v51, %v926_v51 }
 0x16e   :  { %v930_v54 = vpack.c.bf16 %v927_v53, %v927_v53 }
 0x170   :  { %1091 = vmatprep.mubr.bf16.mxu1 %v930_v54 }
 0x171   :  { %1092 = vmatmul.mubr.bf16.vlgmr.msra.gmra.mxu1 %v929_v55 }
 0x172   :  { %1573 = vmatprep.mubr.msk.bf16.mxu1 %vm1866_vm0, %v1865_v16  ;;  %1566 = vmatpush3.bf16.msra.mxu1 %v1785_v59 }
 0x173   :  { %1567 = vmatprep.subr.bf16.mxu1 %v1865_v16 }
 0x176   :  { %1568 = vmatpush3.bf16.msra.mxu1 %v1786_v60 }
 0x177   :  { %1569 = vmatprep.subr.bf16.mxu1 %v1865_v16 }
 0x17a   :  { %1570 = vmatpush3.bf16.msra.mxu1 %v1787_v6 }
 0x17b   :  { %1571 = vmatprep.subr.bf16.mxu1 %v1865_v16 }
 0x17e   :  { %1572 = vmatpush3.bf16.msra.mxu1 %v1788_v7 }
 0x17f   :  { %1577 = vmatprep.subr.bf16.mxu1 %v1865_v16 }
 0x231   :  { %v1522_v61 = vpop.f32.mrf.mxu1 }
 0x233   :  { %v1523_v63 = vpop.f32.mrf.mxu1 }
 0x234   :  { %v1524_v0 = vadd.f32 %v1523_v63, %v1522_v61 }
 0x235   :  { %v1525_v1 = vpop.f32.mrf.mxu1 }
 0x236   :  { %v1094_v2 = vadd.f32 %v1524_v0, %v928_v62 }
 0x237   :  { %v1526_v3 = vpop.f32.mrf.mxu1 }
 0x238   :  { %v1099_v4 = vmax.f32 %v1094_v2, 0.0 }
 0x23a   :  { %v1101_v5 = vpack.c.bf16 %v1099_v4, %v1099_v4 }
 0x23c   :  { %1562 = vmatmul.mubr.bf16.vlgmr.msra.gmra.mxu0 %v1101_v5 }
 0x2fc   :  { %v1200_v9 = vpop.f32.mrf.mxu0 }
 0x2fd   :  { %v1201_v10 = vadd.f32 %v1200_v9, %v1100_v8 }
 0x2fe   :  { %v1563_v11 = vpop.f32.mrf.mxu0 }
 0x2ff   :  { %v1206_v12 = vmax.f32 %v1201_v10, 0.0 }
 0x300   :  { %v1203_v13 = vpop.f32.mrf.mxu0 }
 0x301   :  { %v1208_v15 = vpack.c.bf16 %v1206_v12, %v1206_v12 }
 0x302   :  { %v1564_v17 = vpop.f32.mrf.mxu0 }
 0x303   :  { %1574 = vmatmul.mubr.msk.bf16.vlgmr.msra.gmra.mxu1 %vm1241_vm1, %v1208_v15 }
 0x304   :  { %1578 = vmatpush3.bf16.msra.mxu1 %v1789_v14  ;;  %1581 = vmatprep.mubr.msk.bf16.mxu1 %vm1866_vm0, %v1865_v16 }
 0x305   :  { %1579 = vmatprep.subr.bf16.mxu1 %v1865_v16 }
 0x308   :  { %1580 = vmatpush3.bf16.msra.mxu1 %v1790_v18 }
 0x3c3   :  { %v1279_v20 = vpop.f32.mrf.mxu1 }
 0x3c4   :  { %v1280_v21 = vadd.f32 %v1279_v20, %v1207_v19 }
 0x3c5   :  { %v1575_v22 = vpop.f32.mrf.mxu1 }
 0x3c6   :  { %v1285_v23 = vmax.f32 %v1280_v21, 0.0 }
 0x3c7   :  { %v1282_v24 = vpop.f32.mrf.mxu1 }
 0x3c8   :  { %v1287_v25 = vpack.c.bf16 %v1285_v23, %v1285_v23 }
 0x3c9   :  { %v1576_v26 = vpop.f32.mrf.mxu1 }
 0x3ca   :  { %1582 = vmatmul.mubr.msk.bf16.vlgmr.msra.gmra.mxu1 %vm1304_vm2, %v1287_v25 }
 0x48a   :  { %v1342_v28 = vpop.f32.mrf.mxu1 }
 0x48b   :  { %v1343_v29 = vadd.f32 %v1342_v28, %v1286_v27 }
 0x48c   :  { %v1583_v30 = vpop.f32.mrf.mxu1 }
 0x48d   :  { %v1348_v16 = vsub.f32 0.0, %v1343_v29 }
 0x48e   :  { %v1345_v31 = vpop.f32.mrf.mxu1 }
 0x48f   :  { %v1349_v32 = vmul.f32 1.442695, %v1348_v16 }
 0x490   :  { %v1584_v33 = vpop.f32.mrf.mxu1 }
 0x491   :  { %1791 = vpow2.f32 %v1349_v32 }
 0x49e   :  { %v1792_v34 = vpop.eup %1791 }
 0x49f   :  { %v1351_v35 = vadd.f32 1.0, %v1792_v34 }
 0x4a1   :  { %1793 = vrcp.f32 %v1351_v35 }
 0x4ae   :  { %v1794_v36 = vpop.eup %1793 }
 0x4af   :  { %1355 = vst.msk [vmem:[%s2036_s7] sm:$0xff] %vm1354_vm3, %v1794_v36 }
 0x4b0   :  { %1360 = vsyncpa [#allocation3], 1 }
 0x4b1   :  { %1361 = vsyncpa [#allocation5], 1 }

</bundles_post_ra>
